<compile_context>
chip_gen: v7x
topology: tpu7x:2x2x1
jax: 0.10.0
libtpu: 0.0.40
codegen_flags: <defaults>
</compile_context>

<pallas_src>
import jax
import jax.numpy as jnp
from jax.experimental import pallas as pl
from jax.experimental.pallas import tpu as pltpu


def _fista_kernel(coeff_ref, last_x_ref, y_ref, phi_ref, x_ref):
    # Block shapes per grid step (two layouts share this kernel):
    #   4-D path : last_x (nb, F, tH, W)   y (nb, tH, W)   phi (F, tH, W)
    #   fused    : last_x (nb, F, tS)      y (nb, 1, tS)   phi (F, tS)
    #   coeff    : (1,) f32 in SMEM,  coeff = (1 + t) * step_size
    num_frames = last_x_ref.shape[1]
    sp_shape = (last_x_ref.shape[0],) + tuple(last_x_ref.shape[2:])

    y = y_ref[...].reshape(sp_shape).astype(jnp.float32)

    # y_t accumulated in f32 with a short unrolled loop over frames. Per-frame
    # products stay in the input dtype; only the accumulation / residual are f32.
    acc = (last_x_ref[:, 0] * jnp.expand_dims(phi_ref[0], 0)).astype(jnp.float32)
    for f in range(1, num_frames):
        acc = acc + (last_x_ref[:, f] *
                     jnp.expand_dims(phi_ref[f], 0)).astype(jnp.float32)

    # resid = (1 + t) * step_size * (y_t - y);  x_f = last_x_f - resid * phi_f
    resid = (coeff_ref[0] * (acc - y)).astype(x_ref.dtype)
    for f in range(num_frames):
        phi_f = jnp.expand_dims(phi_ref[f], 0)
        x_ref[:, f] = last_x_ref[:, f] - resid * phi_f


def _sublane_multiple(dtype):
    return {4: 8, 2: 16, 1: 32}.get(jnp.dtype(dtype).itemsize, 8)


def _round_up(x, m):
    return ((x + m - 1) // m) * m


def _cdiv(a, b):
    return (a + b - 1) // b


def _choose_tiles(B, spatial, gran, unit_lastx, unit_y, unit_phi, budget_bytes):
    """Pick (nb, tile): the largest per-step blocks whose single-buffered VMEM
    footprint fits budget_bytes.  `tile` is either the full `spatial` extent or
    a multiple of `gran`; `unit_*` are bytes per unit of the tiled axis (per
    batch element where applicable), already including sublane padding."""
    def per_step(nb, tile):
        return tile * (2 * nb * unit_lastx + nb * unit_y + unit_phi)

    nb, tile = B, spatial
    # Shrink the batch block first (keeps the spatial DMAs long), then the tile.
    while per_step(nb, tile) > budget_bytes and nb > 1:
        nb = (nb + 1) // 2
    while per_step(nb, tile) > budget_bytes and tile > gran:
        tile = max(gran, ((tile // 2) // gran) * gran)
    return nb, tile


def _ensure_two_steps(B, nb, spatial, tile, gran):
    """v7x has 2 TensorCores per chip; make sure the (parallel) grid has >= 2
    steps when the problem allows it so both cores get work."""
    if _cdiv(spatial, tile) * _cdiv(B, nb) >= 2:
        return nb, tile
    if B >= 2:
        return (B + 1) // 2, tile
    if spatial >= 2 * gran:
        return nb, max(gran, _round_up(_cdiv(spatial, 2), gran))
    return nb, tile


def fista_forward(last_x, y, phi, t, step_size, *,
                  block_budget_bytes=12 * 1024 * 1024, donate_last_x=False):
    """Pallas implementation of Fista.forward (identity denoiser).

    last_x: (B, F, H, W); y: (B, H, W); phi: (F, H, W); t: learned momentum
    scalar (shape (1,) like the nn.Parameter).  Returns (x, y, phi, symmetric)
    mirroring the PyTorch module.
    """
    B, F, H, W = last_x.shape
    assert phi.shape == (F, H, W)
    assert y.shape == (B, H, W)

    dtype = last_x.dtype
    itemsize = jnp.dtype(dtype).itemsize
    ms = _sublane_multiple(dtype)

    # Fold momentum + step size into one SMEM scalar: coeff = (1 + t) * step_size.
    coeff = ((1.0 + jnp.asarray(t, jnp.float32).reshape(())) *
             jnp.float32(step_size)).reshape((1,))

    fused = (W % 128 != 0)
    if not fused:
        # 4-D layout: W is the lane axis (multiple of 128 -> unmasked stores),
        # H is tiled on the sublane axis in dtype-dependent multiples.
        spatial, gran = H, ms
        unit_lastx = F * W * itemsize
        unit_y = W * itemsize
        unit_phi = F * W * itemsize
    else:
        # Fused-spatial layout: (H, W) -> S, tiled in multiples of 128 lanes so
        # stores stay lane-dense for odd W.  F lands on the sublane axis of the
        # blocks, so its padding is included in the VMEM budget.
        spatial, gran = H * W, 128
        f_pad = _round_up(F, ms)
        unit_lastx = f_pad * itemsize
        unit_y = ms * itemsize                 # y block (nb, 1, tS): pad 1 -> ms
        unit_phi = f_pad * itemsize

    nb, tile = _choose_tiles(B, spatial, gran, unit_lastx, unit_y, unit_phi,
                             block_budget_bytes)
    nb, tile = _ensure_two_steps(B, nb, spatial, tile, gran)
    grid = (_cdiv(spatial, tile), _cdiv(B, nb))    # spatial OUTER, batch INNER

    if not fused:
        in_specs = [
            pl.BlockSpec(memory_space=pltpu.MemorySpace.SMEM),              # coeff
            pl.BlockSpec((nb, F, tile, W), lambda s, b: (b, 0, s, 0)),      # last_x
            pl.BlockSpec((nb, tile, W), lambda s, b: (b, s, 0)),            # y
            pl.BlockSpec((F, tile, W), lambda s, b: (0, s, 0)),             # phi
        ]
        out_spec = pl.BlockSpec((nb, F, tile, W), lambda s, b: (b, 0, s, 0))
        out_shape = jax.ShapeDtypeStruct((B, F, H, W), dtype)
        operands = (coeff, last_x, y, phi)
    else:
        S = spatial
        in_specs = [
            pl.BlockSpec(memory_space=pltpu.MemorySpace.SMEM),              # coeff
            pl.BlockSpec((nb, F, tile), lambda s, b: (b, 0, s)),            # last_x
            pl.BlockSpec((nb, 1, tile), lambda s, b: (b, 0, s)),            # y
            pl.BlockSpec((F, tile), lambda s, b: (0, s)),                   # phi
        ]
        out_spec = pl.BlockSpec((nb, F, tile), lambda s, b: (b, 0, s))
        out_shape = jax.ShapeDtypeStruct((B, F, S), dtype)
        operands = (coeff, last_x.reshape(B, F, S), y.reshape(B, 1, S),
                    phi.reshape(F, S))

    # Advisory roofline numbers so XLA can schedule neighbors around the
    # kernel's HBM window: ~4 flops/element; traffic = last_x in + x out + y + phi.
    cost = pl.CostEstimate(
        flops=4 * B * F * H * W,
        transcendentals=0,
        bytes_accessed=(2 * B * F + B + F) * H * W * itemsize)

    # Double-buffered blocks (<= 2 * budget) + f32 temporaries + headroom;
    # capped well below v7x's 64 MiB physical VMEM per TensorCore.
    vmem_limit = int(min(56 * 1024 * 1024,
                         2 * block_budget_bytes + 24 * 1024 * 1024))

    extra = {}
    if donate_last_x:
        # When FISTA is iterated (x fed back as last_x), alias the last_x buffer
        # to the output to avoid an extra HBM allocation + copy per iteration.
        extra["input_output_aliases"] = {1: 0}

    x = pl.pallas_call(
        _fista_kernel,
        out_shape=out_shape,
        grid=grid,
        in_specs=in_specs,
        out_specs=out_spec,
        compiler_params=pltpu.CompilerParams(
            dimension_semantics=("parallel", "parallel"),
            vmem_limit_bytes=vmem_limit),
        cost_estimate=cost,
        **extra,
    )(*operands)

    if fused:
        x = x.reshape(B, F, H, W)

    # TODO(synk): `denoiser` is an externally injected nn.Module; modeled here
    # as the identity denoiser: denoiser(x) -> (x, x).
    symmetric = x
    return x, y, phi, symmetric


def fista_ref(last_x, y, phi, t, step_size):
    """Pure-JAX reference of the PyTorch forward (identity denoiser)."""
    y_t = jnp.sum(last_x * phi[None], axis=1)                        # (B, H, W)
    x = last_x - step_size * (y_t - y)[:, None, :, :] * phi[None]    # (B, F, H, W)
    return x + t * (x - last_x)


if __name__ == "__main__":
    key = jax.random.PRNGKey(0)
    keys = jax.random.split(key, 9)

    step_size = 0.1
    t_param = jnp.ones((1,), dtype=jnp.float32)   # nn.Parameter(torch.ones(1))

    def run_case(ks, B, F, H, W, dtype=jnp.float32, **kw):
        last_x = jax.random.normal(ks[0], (B, F, H, W)).astype(dtype)
        phi = jax.random.normal(ks[1], (F, H, W)).astype(dtype)
        y = jax.random.normal(ks[2], (B, H, W)).astype(dtype)
        x, _, _, sym = fista_forward(last_x, y, phi, t_param, step_size, **kw)
        x = jax.block_until_ready(x)
        ref = fista_ref(last_x.astype(jnp.float32), y.astype(jnp.float32),
                        phi.astype(jnp.float32), 1.0, step_size)
        return x, sym, ref

    # 1) Lane-aligned 4-D path; grid is split along the batch axis so both v7x
    #    TensorCores get a step.
    x, sym, ref = run_case(keys[0:3], 2, 4, 16, 128)
    assert x.shape == (2, 4, 16, 128)
    assert jnp.allclose(x, ref, atol=1e-5, rtol=1e-5), "mismatch (4-D path)"
    assert jnp.allclose(sym, ref, atol=1e-5, rtol=1e-5)

    # 2) Tiled 4-D path with ragged tiles: a small VMEM budget forces nb=1 and
    #    an H tile of 16 over H=40 (ragged tail), grid = (3, 3).
    x, _, ref = run_case(keys[3:6], 3, 5, 40, 128, block_budget_bytes=192 * 1024)
    assert jnp.allclose(x, ref, atol=1e-5, rtol=1e-5), "mismatch (tiled/ragged path)"

    # 3) Fused-spatial path: W=48 is not a multiple of 128, so (H, W) is fused
    #    to S=768 and tiled on the 128-lane axis.
    x, _, ref = run_case(keys[6:9], 2, 4, 16, 48)
    assert jnp.allclose(x, ref, atol=1e-5, rtol=1e-5), "mismatch (fused-spatial path)"

    # 4) bf16 smoke test (native bf16 VPU products, f32 accumulation).
    x, _, ref = run_case(keys[0:3], 2, 4, 16, 128, dtype=jnp.bfloat16)
    assert jnp.allclose(x.astype(jnp.float32), ref, atol=0.5, rtol=0.1), \
        "mismatch (bf16 path)"

    print("KERNEL_OK")
</pallas_src>

<mosaic_0001>
module attributes {stable_mosaic.version = 11 : i64} {
  func.func @_fista_kernel(%arg0: i32, %arg1: i32, %arg2: memref<1xf32, #tpu.memory_space<smem>>, %arg3: memref<1x4x16x128xf32, #tpu.memory_space<vmem>>, %arg4: memref<1x16x128xf32, #tpu.memory_space<vmem>>, %arg5: memref<4x16x128xf32, #tpu.memory_space<vmem>>, %arg6: memref<1x4x16x128xf32, #tpu.memory_space<vmem>>) attributes {dimension_semantics = [#tpu.dimension_semantics<parallel>, #tpu.dimension_semantics<parallel>], iteration_bounds = array<i64: 1, 2>, scalar_prefetch = 0 : i64, scratch_operands = 0 : i64, tpu.core_type = #tpu.core_type<tc>, window_params = [{transform_indices = @transform_0, window_bounds = array<i64: 1>}, {transform_indices = @transform_1, window_bounds = array<i64: 1, 4, 16, 128>}, {transform_indices = @transform_2, window_bounds = array<i64: 1, 16, 128>}, {transform_indices = @transform_3, window_bounds = array<i64: 4, 16, 128>}, {transform_indices = @transform_4, window_bounds = array<i64: 1, 4, 16, 128>}]} {
    %c0 = arith.constant 0 : index
    %c0_0 = arith.constant 0 : index
    %c0_1 = arith.constant 0 : index
    %0 = vector.load %arg4[%c0, %c0_0, %c0_1] : memref<1x16x128xf32, #tpu.memory_space<vmem>>, vector<1x16x128xf32>
    %c0_2 = arith.constant 0 : index
    %c0_3 = arith.constant 0 : index
    %c0_4 = arith.constant 0 : index
    %c0_5 = arith.constant 0 : index
    %1 = vector.load %arg3[%c0_2, %c0_3, %c0_4, %c0_5] : memref<1x4x16x128xf32, #tpu.memory_space<vmem>>, vector<1x1x16x128xf32>
    %2 = vector.shape_cast %1 : vector<1x1x16x128xf32> to vector<1x16x128xf32>
    %c0_6 = arith.constant 0 : index
    %c0_7 = arith.constant 0 : index
    %c0_8 = arith.constant 0 : index
    %3 = vector.load %arg5[%c0_6, %c0_7, %c0_8] : memref<4x16x128xf32, #tpu.memory_space<vmem>>, vector<1x16x128xf32>
    %4 = vector.shape_cast %3 : vector<1x16x128xf32> to vector<16x128xf32>
    %5 = vector.shape_cast %4 : vector<16x128xf32> to vector<1x16x128xf32>
    %6 = arith.mulf %2, %5 : vector<1x16x128xf32>
    %c0_9 = arith.constant 0 : index
    %c1 = arith.constant 1 : index
    %c0_10 = arith.constant 0 : index
    %c0_11 = arith.constant 0 : index
    %7 = vector.load %arg3[%c0_9, %c1, %c0_10, %c0_11] : memref<1x4x16x128xf32, #tpu.memory_space<vmem>>, vector<1x1x16x128xf32>
    %8 = vector.shape_cast %7 : vector<1x1x16x128xf32> to vector<1x16x128xf32>
    %c1_12 = arith.constant 1 : index
    %c0_13 = arith.constant 0 : index
    %c0_14 = arith.constant 0 : index
    %9 = vector.load %arg5[%c1_12, %c0_13, %c0_14] : memref<4x16x128xf32, #tpu.memory_space<vmem>>, vector<1x16x128xf32>
    %10 = vector.shape_cast %9 : vector<1x16x128xf32> to vector<16x128xf32>
    %11 = vector.shape_cast %10 : vector<16x128xf32> to vector<1x16x128xf32>
    %12 = arith.mulf %8, %11 : vector<1x16x128xf32>
    %13 = arith.addf %6, %12 : vector<1x16x128xf32>
    %c0_15 = arith.constant 0 : index
    %c2 = arith.constant 2 : index
    %c0_16 = arith.constant 0 : index
    %c0_17 = arith.constant 0 : index
    %14 = vector.load %arg3[%c0_15, %c2, %c0_16, %c0_17] : memref<1x4x16x128xf32, #tpu.memory_space<vmem>>, vector<1x1x16x128xf32>
    %15 = vector.shape_cast %14 : vector<1x1x16x128xf32> to vector<1x16x128xf32>
    %c2_18 = arith.constant 2 : index
    %c0_19 = arith.constant 0 : index
    %c0_20 = arith.constant 0 : index
    %16 = vector.load %arg5[%c2_18, %c0_19, %c0_20] : memref<4x16x128xf32, #tpu.memory_space<vmem>>, vector<1x16x128xf32>
    %17 = vector.shape_cast %16 : vector<1x16x128xf32> to vector<16x128xf32>
    %18 = vector.shape_cast %17 : vector<16x128xf32> to vector<1x16x128xf32>
    %19 = arith.mulf %15, %18 : vector<1x16x128xf32>
    %20 = arith.addf %13, %19 : vector<1x16x128xf32>
    %c0_21 = arith.constant 0 : index
    %c3 = arith.constant 3 : index
    %c0_22 = arith.constant 0 : index
    %c0_23 = arith.constant 0 : index
    %21 = vector.load %arg3[%c0_21, %c3, %c0_22, %c0_23] : memref<1x4x16x128xf32, #tpu.memory_space<vmem>>, vector<1x1x16x128xf32>
    %22 = vector.shape_cast %21 : vector<1x1x16x128xf32> to vector<1x16x128xf32>
    %c3_24 = arith.constant 3 : index
    %c0_25 = arith.constant 0 : index
    %c0_26 = arith.constant 0 : index
    %23 = vector.load %arg5[%c3_24, %c0_25, %c0_26] : memref<4x16x128xf32, #tpu.memory_space<vmem>>, vector<1x16x128xf32>
    %24 = vector.shape_cast %23 : vector<1x16x128xf32> to vector<16x128xf32>
    %25 = vector.shape_cast %24 : vector<16x128xf32> to vector<1x16x128xf32>
    %26 = arith.mulf %22, %25 : vector<1x16x128xf32>
    %27 = arith.addf %20, %26 : vector<1x16x128xf32>
    %c0_27 = arith.constant 0 : index
    %28 = memref.load %arg2[%c0_27] : memref<1xf32, #tpu.memory_space<smem>>
    %29 = arith.subf %27, %0 : vector<1x16x128xf32>
    %30 = vector.broadcast %28 : f32 to vector<1x16x128xf32>
    %31 = arith.mulf %30, %29 : vector<1x16x128xf32>
    %c0_28 = arith.constant 0 : index
    %c0_29 = arith.constant 0 : index
    %c0_30 = arith.constant 0 : index
    %32 = vector.load %arg5[%c0_28, %c0_29, %c0_30] : memref<4x16x128xf32, #tpu.memory_space<vmem>>, vector<1x16x128xf32>
    %33 = vector.shape_cast %32 : vector<1x16x128xf32> to vector<16x128xf32>
    %34 = vector.shape_cast %33 : vector<16x128xf32> to vector<1x16x128xf32>
    %c0_31 = arith.constant 0 : index
    %c0_32 = arith.constant 0 : index
    %c0_33 = arith.constant 0 : index
    %c0_34 = arith.constant 0 : index
    %35 = vector.load %arg3[%c0_31, %c0_32, %c0_33, %c0_34] : memref<1x4x16x128xf32, #tpu.memory_space<vmem>>, vector<1x1x16x128xf32>
    %36 = vector.shape_cast %35 : vector<1x1x16x128xf32> to vector<1x16x128xf32>
    %37 = arith.mulf %31, %34 : vector<1x16x128xf32>
    %38 = arith.subf %36, %37 : vector<1x16x128xf32>
    %c0_35 = arith.constant 0 : index
    %c0_36 = arith.constant 0 : index
    %c0_37 = arith.constant 0 : index
    %c0_38 = arith.constant 0 : index
    %39 = vector.load %arg6[%c0_35, %c0_36, %c0_37, %c0_38] : memref<1x4x16x128xf32, #tpu.memory_space<vmem>>, vector<1x1x16x128xf32>
    %40 = vector.shape_cast %39 : vector<1x1x16x128xf32> to vector<1x16x128xf32>
    %41 = vector.shape_cast %38 : vector<1x16x128xf32> to vector<1x1x16x128xf32>
    tpu.vector_store %arg6[%c0_35, %c0_36, %c0_37, %c0_38], %41 {strides = array<i32>} : memref<1x4x16x128xf32, #tpu.memory_space<vmem>>, vector<1x1x16x128xf32>,
    %c1_39 = arith.constant 1 : index
    %c0_40 = arith.constant 0 : index
    %c0_41 = arith.constant 0 : index
    %42 = vector.load %arg5[%c1_39, %c0_40, %c0_41] : memref<4x16x128xf32, #tpu.memory_space<vmem>>, vector<1x16x128xf32>
    %43 = vector.shape_cast %42 : vector<1x16x128xf32> to vector<16x128xf32>
    %44 = vector.shape_cast %43 : vector<16x128xf32> to vector<1x16x128xf32>
    %c0_42 = arith.constant 0 : index
    %c1_43 = arith.constant 1 : index
    %c0_44 = arith.constant 0 : index
    %c0_45 = arith.constant 0 : index
    %45 = vector.load %arg3[%c0_42, %c1_43, %c0_44, %c0_45] : memref<1x4x16x128xf32, #tpu.memory_space<vmem>>, vector<1x1x16x128xf32>
    %46 = vector.shape_cast %45 : vector<1x1x16x128xf32> to vector<1x16x128xf32>
    %47 = arith.mulf %31, %44 : vector<1x16x128xf32>
    %48 = arith.subf %46, %47 : vector<1x16x128xf32>
    %c0_46 = arith.constant 0 : index
    %c1_47 = arith.constant 1 : index
    %c0_48 = arith.constant 0 : index
    %c0_49 = arith.constant 0 : index
    %49 = vector.load %arg6[%c0_46, %c1_47, %c0_48, %c0_49] : memref<1x4x16x128xf32, #tpu.memory_space<vmem>>, vector<1x1x16x128xf32>
    %50 = vector.shape_cast %49 : vector<1x1x16x128xf32> to vector<1x16x128xf32>
    %51 = vector.shape_cast %48 : vector<1x16x128xf32> to vector<1x1x16x128xf32>
    tpu.vector_store %arg6[%c0_46, %c1_47, %c0_48, %c0_49], %51 {strides = array<i32>} : memref<1x4x16x128xf32, #tpu.memory_space<vmem>>, vector<1x1x16x128xf32>,
    %c2_50 = arith.constant 2 : index
    %c0_51 = arith.constant 0 : index
    %c0_52 = arith.constant 0 : index
    %52 = vector.load %arg5[%c2_50, %c0_51, %c0_52] : memref<4x16x128xf32, #tpu.memory_space<vmem>>, vector<1x16x128xf32>
    %53 = vector.shape_cast %52 : vector<1x16x128xf32> to vector<16x128xf32>
    %54 = vector.shape_cast %53 : vector<16x128xf32> to vector<1x16x128xf32>
    %c0_53 = arith.constant 0 : index
    %c2_54 = arith.constant 2 : index
    %c0_55 = arith.constant 0 : index
    %c0_56 = arith.constant 0 : index
    %55 = vector.load %arg3[%c0_53, %c2_54, %c0_55, %c0_56] : memref<1x4x16x128xf32, #tpu.memory_space<vmem>>, vector<1x1x16x128xf32>
    %56 = vector.shape_cast %55 : vector<1x1x16x128xf32> to vector<1x16x128xf32>
    %57 = arith.mulf %31, %54 : vector<1x16x128xf32>
    %58 = arith.subf %56, %57 : vector<1x16x128xf32>
    %c0_57 = arith.constant 0 : index
    %c2_58 = arith.constant 2 : index
    %c0_59 = arith.constant 0 : index
    %c0_60 = arith.constant 0 : index
    %59 = vector.load %arg6[%c0_57, %c2_58, %c0_59, %c0_60] : memref<1x4x16x128xf32, #tpu.memory_space<vmem>>, vector<1x1x16x128xf32>
    %60 = vector.shape_cast %59 : vector<1x1x16x128xf32> to vector<1x16x128xf32>
    %61 = vector.shape_cast %58 : vector<1x16x128xf32> to vector<1x1x16x128xf32>
    tpu.vector_store %arg6[%c0_57, %c2_58, %c0_59, %c0_60], %61 {strides = array<i32>} : memref<1x4x16x128xf32, #tpu.memory_space<vmem>>, vector<1x1x16x128xf32>,
    %c3_61 = arith.constant 3 : index
    %c0_62 = arith.constant 0 : index
    %c0_63 = arith.constant 0 : index
    %62 = vector.load %arg5[%c3_61, %c0_62, %c0_63] : memref<4x16x128xf32, #tpu.memory_space<vmem>>, vector<1x16x128xf32>
    %63 = vector.shape_cast %62 : vector<1x16x128xf32> to vector<16x128xf32>
    %64 = vector.shape_cast %63 : vector<16x128xf32> to vector<1x16x128xf32>
    %c0_64 = arith.constant 0 : index
    %c3_65 = arith.constant 3 : index
    %c0_66 = arith.constant 0 : index
    %c0_67 = arith.constant 0 : index
    %65 = vector.load %arg3[%c0_64, %c3_65, %c0_66, %c0_67] : memref<1x4x16x128xf32, #tpu.memory_space<vmem>>, vector<1x1x16x128xf32>
    %66 = vector.shape_cast %65 : vector<1x1x16x128xf32> to vector<1x16x128xf32>
    %67 = arith.mulf %31, %64 : vector<1x16x128xf32>
    %68 = arith.subf %66, %67 : vector<1x16x128xf32>
    %c0_68 = arith.constant 0 : index
    %c3_69 = arith.constant 3 : index
    %c0_70 = arith.constant 0 : index
    %c0_71 = arith.constant 0 : index
    %69 = vector.load %arg6[%c0_68, %c3_69, %c0_70, %c0_71] : memref<1x4x16x128xf32, #tpu.memory_space<vmem>>, vector<1x1x16x128xf32>
    %70 = vector.shape_cast %69 : vector<1x1x16x128xf32> to vector<1x16x128xf32>
    %71 = vector.shape_cast %68 : vector<1x16x128xf32> to vector<1x1x16x128xf32>
    tpu.vector_store %arg6[%c0_68, %c3_69, %c0_70, %c0_71], %71 {strides = array<i32>} : memref<1x4x16x128xf32, #tpu.memory_space<vmem>>, vector<1x1x16x128xf32>,
    return
  }
  func.func @transform_0(%arg0: i32, %arg1: i32) -> i32 {
    %c0_i32 = arith.constant 0 : i32
    %c0_i32_0 = arith.constant 0 : i32
    return %c0_i32 : i32
  }
  func.func @transform_1(%arg0: i32, %arg1: i32) -> (i32, i32, i32, i32) {
    %c0_i32 = arith.constant 0 : i32
    %c0_i32_0 = arith.constant 0 : i32
    %c0_i32_1 = arith.constant 0 : i32
    return %arg1, %c0_i32, %arg0, %c0_i32_0 : i32, i32, i32, i32
  }
  func.func @transform_2(%arg0: i32, %arg1: i32) -> (i32, i32, i32) {
    %c0_i32 = arith.constant 0 : i32
    %c0_i32_0 = arith.constant 0 : i32
    return %arg1, %arg0, %c0_i32 : i32, i32, i32
  }
  func.func @transform_3(%arg0: i32, %arg1: i32) -> (i32, i32, i32) {
    %c0_i32 = arith.constant 0 : i32
    %c0_i32_0 = arith.constant 0 : i32
    %c0_i32_1 = arith.constant 0 : i32
    return %c0_i32, %arg0, %c0_i32_0 : i32, i32, i32
  }
  func.func @transform_4(%arg0: i32, %arg1: i32) -> (i32, i32, i32, i32) {
    %c0_i32 = arith.constant 0 : i32
    %c0_i32_0 = arith.constant 0 : i32
    %c0_i32_1 = arith.constant 0 : i32
    return %arg1, %c0_i32, %arg0, %c0_i32_0 : i32, i32, i32, i32
  }
}

</mosaic_0001>

<bundles_post_ra>
// kernel: tpu_custom_call.1
= control target key start
LH: loop header
LB: loop body
LE: loop exit
PB: predicated region body
PF: predicated region fallthrough
CT: control target
= control target key end

     0   :  { %s1162_s0 = inlined_call_operand.<no memory space> [shape: f32[1], index: 0, kind: input, shape index: {}]   ;;  %s1163_s1 = inlined_call_operand.hbm [shape: f32[2,4,16,128], index: 1, kind: input, shape index: {}]   ;;  %s1164_s2 = inlined_call_operand.hbm [shape: f32[2,16,128], index: 2, kind: input, shape index: {}]   ;;  %s1165_s3 = inlined_call_operand.hbm [shape: f32[4,16,128], index: 3, kind: input, shape index: {}]   ;;  %s1166_s4 = inlined_call_operand.hbm [shape: f32[2,4,16,128], index: 4, kind: output, shape index: {}]  }
   0x1   :  { %1173 = sst [smem:[#allocation15_spill]] %s1163_s1 }
   0x2   :  { %1174 = sst [smem:[#allocation16_spill]] %s1165_s3 }
   0x3   :  { %9 = sst [smem:[#allocation2]] %s1162_s0 }
   0x4   :  { %10 = vsyncpa [#allocation4], 0 }
   0x5   :  { %12 = vsyncpa [#allocation4 + $0x1], 0 }
   0x6   :  { %13 = vsyncpa [#allocation7], 0 }
   0x7   :  { %15 = vsyncpa [#allocation7 + $0x1], 0 }
   0x8   :  { %16 = vsyncpa [#allocation5], 0 }
   0x9   :  { %18 = vsyncpa [#allocation5 + $0x1], 0  ;;  %s868_s17 = smov 0   ;;  %s870_s18 = smov 0  }
   0xa   :  { %s872_s19 = smov 0   ;;  %s874_s20 = smov 0  }
   0xb   :  { %s876_s21 = smov 0   ;;  %s878_s22 = smov 0  }
   0xc LB: > { %s899_s0 = sadd.s32 4294967295, %s830_s22   ;;  %s529_s23 = sadd.s32 4294967294, %s830_s22   ;;  %s830_s22 = sphi %s878_s22, %s24_s22   ;;  %s826_s21 = sphi %s876_s21, %s1199_s21   ;;  %s822_s20 = sphi %s874_s20, %s1198_s20   ;;  %s818_s19 = sphi %s872_s19, %s1197_s19   ;;  %s814_s18 = sphi %s870_s18, %s1196_s18   ;;  %s810_s17 = sphi %s868_s17, %s1195_s17  }
   0xd   : > { %p79_p0 = scmp.ne.s32.totalorder %s814_s18, %s810_s17  ;;  %p1167_p1 = scmp.eq.s32.totalorder %s899_s0, 0 }
   0xe   : > { %p165_p3 = scmp.eq.s32.totalorder %s529_s23, 1  ;;  %p530_p5 = scmp.ge.s32.totalorder %s830_s22, 1 }
   0xf   : > { %p908_p4 = por %p1167_p1, %p79_p0  ;;  %p172_p7 = scmp.lt.s32.totalorder %s830_s22, 3 }
  0x10   : > { %p913_p6 = por %p165_p3, %p79_p0  ;;  %s832_s27 = smov [#allocation8]  }
  0x11   : > { %s1175_s24 = scalar_select %p908_p4, 1, 0 }
  0x12   : > { %s1176_s25 = scalar_select %p913_p6, 1, 0 }
  0x13   : > { %p918_p8 = pnand %p530_p5, %p172_p7  ;;  %s190_s28 = sshll.u32 %s832_s27, 4  ;;  %s191_s28 = int_to_ptr.vmem [resolvable:$true] %s190_s28 }
  0x14   : > { %s33_s30 = sadd.s32 1, %s826_s21  ;;  %s1179_s3 = sld [smem:[#allocation16_spill]] }
  0x15   : > { %s1177_s26 = scalar_select %p918_p8, 1, 0 }
  0x16   : > { %p580_p9 = pneg %p918_p8 }
  0x18   : > { %p927_p11 = pnand %p580_p9, %p1167_p1 }
  0x1a   : > { %s652_s7 = scalar_lea.hbm %s1179_s3, 1024  ;;  %p654_p13 = pneg %p927_p11 }
  0x1b   : > { %p653_p12 = scmp.ne.s32.totalorder %s1179_s3, %s652_s7  ;;  %p659_p5 = scmp.lt.u32.totalorder %s652_s7, %s1179_s3 }
  0x1d   : > { %p655_p0 = pnand %p654_p13, %p653_p12 }
  0x1f   : > { %p656_p3 = pneg %p655_p0 }
  0x21   : > { %p661_p7 = pnand %p659_p5, %p656_p3 }
  0x23   : > { %664 = shalt.err (!%p661_p7)
}
  0x24   : > { %s665_s12 = scalar_lea.vmem %s191_s28, 1024  ;;  %p673_p2 = scmp.lt.s32.totalorder %s191_s28, %s191_s28 }
  0x25   : > { %p666_p9 = scmp.ne.s32.totalorder %s191_s28, %s665_s12  ;;  %p674_p6 = scmp.lt.s32.totalorder %s665_s12, %s665_s12 }
  0x27   : > { %p668_p10 = pnand %p666_p9, %p654_p13  ;;  %p675_p4 = por %p674_p6, %p673_p2 }
  0x29   : > { %p669_p1 = pneg %p668_p10 }
  0x2b   : > { %p676_p8 = pnand %p675_p4, %p669_p1 }
  0x2d   : > { %679 = shalt.err (!%p676_p8)
}
  0x2e   : > { %s1170_s13 = smov 128   ;;  %s834_s14 = smov 8  }
  0x2f   : > { %583 = dma.hbm_to_vmem [thread:$0]  (!%p927_p11), %s1179_s3, 1024, %s191_s28, [#allocation7], %s1170_s13, %s1170_s13, %s834_s14  }
  0x30   : > { %p34_p1 = scmp.ge.s32.totalorder %s33_s30, 2  ;;  %s66_s23 = sadd.s32 1, %s818_s19 }
  0x31   : > { %p73_p2 = scmp.ne.s32.totalorder %s818_s19, %s814_s18  ;;  %p74_p4 = scmp.eq.s32.totalorder %s830_s22, 0 }
  0x32   : > { %s1201_s30 = smov (%p34_p1, %s33_s30), 0  ;;  %p1182_p8 = scmp.eq.s32.totalorder %s899_s0, 1 }
  0x33   : > { %1180 = sst [smem:[#allocation14_spill]] %s1201_s30  ;;  %p957_p6 = por %p74_p4, %p73_p2 }
  0x34   : > { %p963_p10 = por %p1182_p8, %p73_p2  ;;  %s61_s5 = ssub.s32 %s826_s21, %s1201_s30 }
  0x35   : > { %p596_p11 = scmp.lt.s32.totalorder %s830_s22, 2  ;;  %p64_p12 = scmp.eq.s32.totalorder %s61_s5, 0 }
  0x36   : > { %s971_s28 = sand.u32 1, %s818_s19   ;;  %s567_s8 = sshll.u32 %s826_s21, 10 }
  0x37   : > { %s533_s6 = sshll.u32 %s971_s28, 6  ;;  %s1184_s1 = sld [smem:[#allocation15_spill]] }
  0x38   : > { %s975_s7 = scalar_select %p64_p12, %s818_s19, %s66_s23  }
  0x39   : > { %s208_s12 = scalar_lea.vmem [#allocation3], %s533_s6  ;;  %p987_p13 = pnand %p596_p11, %p957_p6 }
  0x3a   : > { %s217_s15 = sshll.u32 %s208_s12, 4  ;;  %s536_s5 = sshll.u32 %s971_s28, 4  ;;  %s983_s15 = int_to_ptr.vmem [resolvable:$true] %s217_s15 }
  0x3b   : > { %s205_s9 = scalar_lea.sflag [#allocation4], %s971_s28  ;;  %p682_p3 = pneg %p987_p13 }
  0x3d   : > { %s981_s11 = scalar_lea.hbm %s1184_s1, %s567_s8  ;;  %s685_s27 = scalar_lea.hbm %s1184_s1, 2048 }
  0x3e   : > { %s680_s8 = scalar_lea.hbm %s981_s11, 1024  ;;  %p686_p9 = scmp.lt.u32.totalorder %s981_s11, %s1184_s1 }
  0x3f   : > { %p681_p0 = scmp.ne.s32.totalorder %s981_s11, %s680_s8  ;;  %p687_p1 = scmp.lt.u32.totalorder %s685_s27, %s680_s8 }
  0x40   : > { %p689_p4 = scmp.lt.u32.totalorder %s680_s8, %s981_s11 }
  0x41   : > { %p683_p5 = pnand %p682_p3, %p681_p0  ;;  %p688_p2 = por %p687_p1, %p686_p9 }
  0x43   : > { %p684_p7 = pneg %p683_p5  ;;  %p690_p6 = por %p689_p4, %p688_p2 }
  0x45   : > { %p691_p8 = pnand %p690_p6, %p684_p7 }
  0x47   : > { %694 = shalt.err (!%p691_p8)
}
  0x48   : > { %s695_s23 = scalar_lea.vmem %s983_s15, 1024  ;;  %s835_s6 = smov [#allocation3]  }
  0x49   : > { %p696_p11 = scmp.ne.s32.totalorder %s983_s15, %s695_s23  ;;  %s700_s10 = sshll.u32 %s835_s6, 4  ;;  %s701_s10 = int_to_ptr.vmem [resolvable:$false] %s700_s10 }
  0x4a   : > { %s702_s13 = scalar_lea.vmem %s701_s10, 2048  ;;  %p703_p5 = scmp.lt.s32.totalorder %s983_s15, %s701_s10 }
  0x4b   : > { %p698_p12 = pnand %p696_p11, %p682_p3  ;;  %p704_p9 = scmp.lt.s32.totalorder %s702_s13, %s695_s23 }
  0x4d   : > { %p699_p0 = pneg %p698_p12  ;;  %p705_p1 = por %p704_p9, %p703_p5 }
  0x4f   : > { %p706_p2 = pnand %p705_p1, %p699_p0 }
  0x51   : > { %709 = shalt.err (!%p706_p2)
}
  0x52   : > { %s1186_s8 = smov 128   ;;  %s568_s27 = sshll.u32 %s826_s21, 8 }
  0x53   : > { %587 = dma.hbm_to_vmem [thread:$0]  (!%p987_p13), %s981_s11, 1024, %s983_s15, %s205_s9, %s1186_s8, %s1186_s8, %s834_s14  }
  0x54   : > { %s1028_s6 = scalar_lea.hbm %s1164_s2, %s568_s27  ;;  %s231_s10 = scalar_lea.vmem [#allocation6], %s536_s5 }
  0x55   : > { %s240_s13 = sshll.u32 %s231_s10, 4  ;;  %s1187_s1 = sand.u32 1, %s830_s22   ;;  %s1032_s13 = int_to_ptr.vmem [resolvable:$true] %s240_s13 }
  0x56   : > { %s1036_s3 = scalar_lea.sflag [#allocation7], %s1187_s1  ;;  %s710_s30 = scalar_lea.hbm %s1028_s6, 256 }
  0x57   : > { %p711_p7 = scmp.ne.s32.totalorder %s1028_s6, %s710_s30  ;;  %s715_s28 = scalar_lea.hbm %s1164_s2, 512 }
  0x58   : > { %p716_p8 = scmp.lt.u32.totalorder %s1028_s6, %s1164_s2  ;;  %p717_p11 = scmp.lt.u32.totalorder %s715_s28, %s710_s30 }
  0x59   : > { %p713_p4 = pnand %p711_p7, %p682_p3  ;;  %p719_p0 = scmp.lt.u32.totalorder %s710_s30, %s1028_s6 }
  0x5a   : > { %p718_p12 = por %p717_p11, %p716_p8 }
  0x5b   : > { %p714_p6 = pneg %p713_p4 }
  0x5c   : > { %p720_p5 = por %p719_p0, %p718_p12 }
  0x5e   : > { %p721_p9 = pnand %p720_p5, %p714_p6 }
  0x60   : > { %724 = shalt.err (!%p721_p9)
}
  0x61   : > { %s725_s1 = scalar_lea.vmem %s1032_s13, 256  ;;  %s836_s5 = smov [#allocation6]  }
  0x62   : > { %p726_p1 = scmp.ne.s32.totalorder %s1032_s13, %s725_s1  ;;  %s730_s12 = sshll.u32 %s836_s5, 4  ;;  %s731_s12 = int_to_ptr.vmem [resolvable:$false] %s730_s12 }
  0x63   : > { %s732_s23 = scalar_lea.vmem %s731_s12, 512  ;;  %p733_p4 = scmp.lt.s32.totalorder %s1032_s13, %s731_s12 }
  0x64   : > { %p728_p2 = pnand %p726_p1, %p682_p3  ;;  %p734_p8 = scmp.lt.s32.totalorder %s732_s23, %s725_s1 }
  0x66   : > { %p729_p7 = pneg %p728_p2  ;;  %p735_p11 = por %p734_p8, %p733_p4 }
  0x68   : > { %p736_p12 = pnand %p735_p11, %p729_p7 }
  0x6a   : > { %739 = shalt.err (!%p736_p12)
}
  0x6b   : > { %590 = dma.hbm_to_vmem [thread:$0]  (!%p987_p13), %s1028_s6, 256, %s1032_s13, %s1036_s3, %s1186_s8, %s1186_s8, %s834_s14  }
  0x6c   : > { %p1188_p3 = scmp.ne.s32.totalorder %s1177_s26, 0 }
  0x6d   : > { %s1068_s30 = sand.u32 (!%p1188_p3), 1, %s814_s18   ;;  %p1189_p6 = scmp.ne.s32.totalorder (!%p1188_p3), %s1175_s24, 0 }
  0x6e   : > { %252 = sbr.rel (%p1188_p3) target bundleno = 161 (0xa1), region = 36  ;;  %s540_s10 = sshll.u32 (!%p1188_p3), %s1068_s30, 6 }
  0x6f   : > { %s255_s11 = scalar_lea.sflag (!%p1188_p3), [#allocation4], %s1068_s30  ;;  %s1074_s16 = scalar_lea.vmem (!%p1188_p3), [#allocation3], %s540_s10 }
  0x75   : > { %793 = dma.done.wait (%p1189_p6), %s255_s11, 1024  }
  0x76   : > { %795 = vsyncadd (%p1189_p6), %s255_s11, 4294966272  ;;  %s263_s3 = sand.u32 1, %s899_s0   ;;  %s541_s26 = sshll.u32 %s1068_s30, 4 }
  0x77   : > { %s264_s14 = scalar_lea.sflag [#allocation7], %s263_s3  ;;  %s1082_s8 = scalar_lea.vmem [#allocation6], %s541_s26 }
  0x78   : > { %797 = dma.done.wait (%p1189_p6), %s264_s14, 256  }
  0x79   : > { %799 = vsyncadd (%p1189_p6), %s264_s14, 4294967040  ;;  %p1190_p13 = scmp.eq.s32.totalorder %s899_s0, 0 }
  0x7b   : > { %801 = dma.done.wait (%p1190_p13), [#allocation7], 1024   ;;  %p1191_p0 = pmov %p1190_p13 }
  0x7c   : > { %v307_v0 = vld [vmem:[%s1074_s16] sm:$0xff]  ;;  %v544_v3 = vld [vmem:[%s1074_s16 + $0x10] sm:$0xff]  ;;  %s1095_s24 = sld [smem:[#allocation2]]  ;;  %v308_v11 = vld [vmem:[%s1074_s16 + $0x8] sm:$0xff]  ;;  %s300_s0 = scalar_lea.vmem [#allocation9], %s540_s10 }
  0x7d   : > { %803 = vsyncadd (%p1191_p0), [#allocation7], 4294966272  ;;  %v309_v1 = vld [vmem:[#allocation8] sm:$0xff]  ;;  %v317_v4 = vld [vmem:[#allocation8 + $0x10] sm:$0xff]  ;;  %s404_s6 = sshll.u32 %s300_s0, 4  ;;  %s569_s13 = sshll.u32 %s822_s20, 10  ;;  %s1108_s6 = int_to_ptr.vmem [resolvable:$true] %s404_s6 }
  0x7e   : > { %v311_v2 = vmul.f32 %v309_v1, %v307_v0  ;;  %v546_v5 = vld [vmem:[%s1074_s16 + $0x20] sm:$0xff]  ;;  %v319_v6 = vmul.f32 %v544_v3, %v317_v4  ;;  %v548_v8 = vld [vmem:[%s1074_s16 + $0x30] sm:$0xff]  ;;  %v310_v12 = vld [vmem:[#allocation8 + $0x8] sm:$0xff]  ;;  %s1113_s28 = scalar_lea.hbm %s1166_s4, %s569_s13  ;;  %s389_s9 = scalar_lea.sflag [#allocation5], %s1068_s30 }
  0x7f   : > { %v327_v7 = vld [vmem:[#allocation8 + $0x20] sm:$0xff]  ;;  %v337_v9 = vld [vmem:[#allocation8 + $0x30] sm:$0xff]  ;;  %v312_v15 = vmul.f32 %v310_v12, %v308_v11  ;;  %v545_v16 = vld [vmem:[%s1074_s16 + $0x18] sm:$0xff]  ;;  %s740_s27 = scalar_lea.vmem %s1108_s6, 1024  ;;  %s837_s1 = smov [#allocation9]  }
  0x80   : > { %v329_v10 = vmul.f32 %v546_v5, %v327_v7  ;;  %v321_v13 = vadd.f32 %v319_v6, %v311_v2  ;;  %v339_v14 = vmul.f32 %v548_v8, %v337_v9  ;;  %v318_v17 = vld [vmem:[#allocation8 + $0x18] sm:$0xff]  ;;  %v547_v18 = vld [vmem:[%s1074_s16 + $0x28] sm:$0xff]  ;;  %v305_v25 = vld [vmem:[%s1082_s8] sm:$0xff]  ;;  %p741_p5 = scmp.ne.s32.totalorder %s1108_s6, %s740_s27  ;;  %s744_s5 = sshll.u32 %s837_s1, 4  ;;  %s745_s5 = int_to_ptr.vmem [resolvable:$false] %s744_s5 }
  0x81   : > { %v320_v19 = vmul.f32 %v545_v16, %v318_v17  ;;  %v328_v20 = vld [vmem:[#allocation8 + $0x28] sm:$0xff]  ;;  %v549_v21 = vld [vmem:[%s1074_s16 + $0x38] sm:$0xff]  ;;  %s746_s12 = scalar_lea.vmem %s745_s5, 2048  ;;  %p747_p2 = scmp.lt.s32.totalorder %s1108_s6, %s745_s5 }
  0x82   : > { %v338_v22 = vld [vmem:[#allocation8 + $0x38] sm:$0xff]  ;;  %v331_v23 = vadd.f32 %v329_v10, %v321_v13  ;;  %v330_v24 = vmul.f32 %v547_v18, %v328_v20  ;;  %v346_v29 = vstv %s1095_s24  ;;  %p742_p9 = pnand %p741_p5, %p963_p10  ;;  %p748_p7 = scmp.lt.s32.totalorder %s746_s12, %s740_s27 }
  0x83   : > { %v322_v26 = vadd.f32 %v320_v19, %v312_v15  ;;  %v340_v27 = vmul.f32 %v549_v21, %v338_v22  ;;  %v306_v32 = vld [vmem:[%s1082_s8 + $0x8] sm:$0xff] }
  0x84   : > { %v341_v28 = vadd.f32 %v339_v14, %v331_v23  ;;  %p743_p1 = pneg %p742_p9  ;;  %p749_p4 = por %p748_p7, %p747_p2 }
  0x85   : > { %v332_v30 = vadd.f32 %v330_v24, %v322_v26 }
  0x86   : > { %v344_v31 = vsub.f32 %v341_v28, %v305_v25  ;;  %p750_p8 = pnand %p749_p4, %p743_p1 }
  0x87   : > { %v342_v33 = vadd.f32 %v340_v27, %v332_v30 }
  0x88   : > { %v347_v34 = vmul.f32 %v346_v29, %v344_v31 }
  0x89   : > { %v345_v35 = vsub.f32 %v342_v33, %v306_v32 }
  0x8a   : > { %v349_v36 = vmul.f32 %v347_v34, %v309_v1  ;;  %v359_v37 = vmul.f32 %v347_v34, %v317_v4  ;;  %v370_v38 = vmul.f32 %v347_v34, %v327_v7  ;;  %v381_v39 = vmul.f32 %v347_v34, %v337_v9 }
  0x8b   : > { %v348_v40 = vmul.f32 %v346_v29, %v345_v35 }
  0x8c   : > { %v351_v41 = vsub.f32 %v307_v0, %v349_v36  ;;  %v361_v42 = vsub.f32 %v544_v3, %v359_v37  ;;  %v372_v43 = vsub.f32 %v546_v5, %v370_v38  ;;  %v383_v44 = vsub.f32 %v548_v8, %v381_v39 }
  0x8d   : > { %v350_v45 = vmul.f32 %v348_v40, %v310_v12  ;;  %v360_v46 = vmul.f32 %v348_v40, %v318_v17  ;;  %v371_v47 = vmul.f32 %v348_v40, %v328_v20  ;;  %v382_v48 = vmul.f32 %v348_v40, %v338_v22 }
  0x8e   : > { %353 = vst [vmem:[%s300_s0] sm:$0xff] %v351_v41  ;;  %552 = vst [vmem:[%s300_s0 + $0x10] sm:$0xff] %v361_v42 }
  0x8f   : > { %556 = vst [vmem:[%s300_s0 + $0x20] sm:$0xff] %v372_v43  ;;  %560 = vst [vmem:[%s300_s0 + $0x30] sm:$0xff] %v383_v44  ;;  %v352_v49 = vsub.f32 %v308_v11, %v350_v45  ;;  %v362_v50 = vsub.f32 %v545_v16, %v360_v46  ;;  %v373_v51 = vsub.f32 %v547_v18, %v371_v47 }
  0x90   : > { %v384_v52 = vsub.f32 %v549_v21, %v382_v48 }
  0x91   : > { %354 = vst [vmem:[%s300_s0 + $0x8] sm:$0xff] %v352_v49  ;;  %553 = vst [vmem:[%s300_s0 + $0x18] sm:$0xff] %v362_v50 }
  0x92   : > { %557 = vst [vmem:[%s300_s0 + $0x28] sm:$0xff] %v373_v51  ;;  %561 = vst [vmem:[%s300_s0 + $0x38] sm:$0xff] %v384_v52 }
  0x93   : > { %753 = shalt.err (!%p750_p8)
}
  0x94   : > { %s754_s23 = scalar_lea.hbm %s1113_s28, 1024  ;;  %s758_s16 = scalar_lea.hbm %s1166_s4, 2048 }
  0x95   : > { %p755_p11 = scmp.ne.s32.totalorder %s1113_s28, %s754_s23  ;;  %p759_p6 = scmp.lt.u32.totalorder %s1113_s28, %s1166_s4 }
  0x96   : > { %p760_p13 = scmp.lt.u32.totalorder %s758_s16, %s754_s23  ;;  %p762_p5 = scmp.lt.u32.totalorder %s754_s23, %s1113_s28 }
  0x97   : > { %p756_p12 = pnand %p755_p11, %p963_p10 }
  0x98   : > { %p761_p0 = por %p760_p13, %p759_p6 }
  0x99   : > { %p757_p3 = pneg %p756_p12 }
  0x9a   : > { %p763_p9 = por %p762_p5, %p761_p0 }
  0x9c   : > { %p764_p1 = pnand %p763_p9, %p757_p3 }
  0x9e   : > { %767 = shalt.err (!%p764_p1)
}
  0x9f   : > { %s838_s14 = smov 128   ;;  %s839_s8 = smov 8  }
  0xa0   : > { %578 = dma.vmem_to_hbm [thread:$0]  (%p963_p10), %s1108_s6, 1024, %s1113_s28, %s389_s9, %s838_s14, %s838_s14, %s839_s8  }
  0xa1 PF: > { %s419_s24 = sand.u32 1, %s810_s17   ;;  %p1192_p2 = scmp.ne.s32.totalorder %s1176_s25, 0 }
  0xa2   : > { %p1193_p7 = scmp.ge.s32.totalorder %s830_s22, 2  ;;  %s420_s0 = scalar_lea.sflag [#allocation5], %s419_s24 }
  0xa4   : > { %p592_p4 = pnand %p1193_p7, %p1192_p2 }
  0xa6   : > { %805 = dma.done.wait (!%p592_p4), %s420_s0, 1024  }
  0xa7   : > { %807 = vsyncadd (!%p592_p4), %s420_s0, 4294966272  ;;  %s24_s22 = sadd.s32 1, %s830_s22   ;;  %s1194_s29 = sld [smem:[#allocation14_spill]] }
  0xa8   : > { %p21_p8 = scmp.ge.s32.totalorder %s24_s22, 4   ;;  %s1195_s17 = smov %s814_s18 }
  0xa9   : > { %s1196_s18 = smov %s818_s19  ;;  %s1197_s19 = smov %s975_s7 }
  0xaa   : > { %s1198_s20 = smov %s826_s21  ;;  %23 = sbr.rel (!%p21_p8) target bundleno = 12 (0xc), region = 108 }
  0xad   : > { %s1199_s21 = smov %s1194_s29 }
  0xb1   :  { %425 = vsyncpa [#allocation4], 1 }
  0xb2   :  { %427 = vsyncpa [#allocation4 + $0x1], 1 }
  0xb3   :  { %428 = vsyncpa [#allocation7], 1 }
  0xb4   :  { %430 = vsyncpa [#allocation7 + $0x1], 1 }
  0xb5   :  { %431 = vsyncpa [#allocation5], 1 }
  0xb6   :  { %433 = vsyncpa [#allocation5 + $0x1], 1 }

</bundles_post_ra>
